<compile_context>
chip_gen: v7x
topology: tpu7x:2x2x1
jax: 0.10.0
libtpu: 0.0.40
codegen_flags: <defaults>
</compile_context>

<pallas_src>
import functools

import jax
import jax.numpy as jnp
from jax import lax
from jax.experimental import pallas as pl
from jax.experimental.pallas import tpu as pltpu


def _round_up(x, m):
    return ((x + m - 1) // m) * m


def _make_kernel(N, D, E, Hm, Ha, TM):
    """One propagation step; edge axis tiled with TM edges per grid step."""
    f32 = jnp.float32
    bf16 = jnp.bfloat16

    def kernel(src_ref, dst_ref, edge_feat_ref, state_ref,
               w1d_ref, w1e_ref, b1_ref, w2_ref, b2_ref,
               wih_ref, whh_ref, bih_ref, bhh_ref,
               out_ref, acc_ref):
        k = pl.program_id(0)

        @pl.when(k == 0)
        def _():
            acc_ref[...] = jnp.zeros_like(acc_ref)

        # ---- per-tile one-hot planes: nodes on sublanes, edges on lanes ----
        # built from lane-dense (1, TM) int32 rows; exactly representable bf16
        node_iota = lax.broadcasted_iota(jnp.int32, (N, TM), 0)
        src_oh = (node_iota == src_ref[...]).astype(bf16)          # (N, TM)
        dst_oh = (node_iota == dst_ref[...]).astype(bf16)          # (N, TM)
        inc = src_oh - dst_oh                                      # (N, TM)

        # ---- gather: state_diff[e,:] = state[src[e]] - state[dst[e]] -------
        state_bf = state_ref[...].astype(bf16)                     # (N, D)
        state_diff = lax.dot_general(                              # (TM, D) f32
            inc, state_bf, (((0,), (0,)), ((), ())),
            preferred_element_type=f32)

        # ---- fused first layers of msg-MLP + attention head ----------------
        ef = edge_feat_ref[...].astype(bf16)                       # (TM, E)
        h = (jnp.dot(state_diff.astype(bf16), w1d_ref[...],
                     preferred_element_type=f32)
             + jnp.dot(ef, w1e_ref[...], preferred_element_type=f32)
             + b1_ref[...])                                        # (TM, Hm+Ha)
        h = jnp.maximum(h, 0.0)

        # ---- fused (block-diagonal) second layers -> [msg | att_logits] ----
        ma = jnp.dot(h.astype(bf16), w2_ref[...],
                     preferred_element_type=f32) + b2_ref[...]     # (TM, 2*Hm)
        msg = ma[:, 0:Hm] * jax.nn.sigmoid(ma[:, Hm:2 * Hm])       # (TM, Hm)

        # ---- scatter-add onto destination nodes (reuses dst_oh) ------------
        acc_ref[...] += jnp.dot(dst_oh, msg.astype(bf16),
                                preferred_element_type=f32)        # (N, Hm)

        # ---- GRUCell state update once all edge tiles are reduced ----------
        @pl.when(k == pl.num_programs(0) - 1)
        def _():
            state = state_ref[...]                                 # (N, D) f32
            sm = acc_ref[...]                                      # (N, Hm) f32
            gi = jnp.dot(sm.astype(bf16), wih_ref[...],
                         preferred_element_type=f32) + bih_ref[...]  # (N, 3D)
            gh = jnp.dot(state_bf, whh_ref[...],
                         preferred_element_type=f32) + bhh_ref[...]  # (N, 3D)
            r = jax.nn.sigmoid(gi[:, 0:D] + gh[:, 0:D])
            z = jax.nn.sigmoid(gi[:, D:2 * D] + gh[:, D:2 * D])
            n = jnp.tanh(gi[:, 2 * D:3 * D] + r * gh[:, 2 * D:3 * D])
            out_ref[...] = (1.0 - z) * n + z * state

    return kernel


def _prepare_edges(edge, edge_feat, N):
    """Lane-dense (1, Mp) src/dst rows + padded edge features + tile size."""
    M, E = edge_feat.shape
    if M <= 256:
        TM = max(_round_up(M, 8), 8)        # single tile (block == full array)
    else:
        TM = 256                            # multiple of 128 lanes
    MP = _round_up(M, TM)
    pad = MP - M
    src = edge[:, 0].astype(jnp.int32)
    dst = edge[:, 1].astype(jnp.int32)
    if pad:
        fill = jnp.full((pad,), N, jnp.int32)   # out of range -> no node matches
        src = jnp.concatenate([src, fill])
        dst = jnp.concatenate([dst, fill])
        edge_feat = jnp.concatenate(
            [edge_feat, jnp.zeros((pad, E), edge_feat.dtype)], axis=0)
    return src.reshape(1, MP), dst.reshape(1, MP), edge_feat, TM, MP


@functools.partial(jax.jit, static_argnames=("num_layer", "num_prop"))
def gnn_forward(node_feat, edge, edge_feat, params, num_layer=1, num_prop=1):
    """Pallas-backed GNN forward (defaults: 1 layer, 1 prop, attention on)."""
    N, D = node_feat.shape
    M, E = edge_feat.shape
    Hm = params['mw2'].shape[0]
    Ha = params['aw2'].shape[0]
    f32, bf16 = jnp.float32, jnp.bfloat16

    src_row, dst_row, edge_feat_p, TM, MP = _prepare_edges(edge, edge_feat, N)
    n_tiles = MP // TM

    # packed / casted parameters: bf16 MXU operands, f32 biases & accumulation
    w1d = jnp.concatenate([params['mw1d'], params['aw1d']], axis=1).astype(bf16)  # (D, Hm+Ha)
    w1e = jnp.concatenate([params['mw1e'], params['aw1e']], axis=1).astype(bf16)  # (E, Hm+Ha)
    b1 = jnp.concatenate([params['mb1'], params['ab1']], axis=1).astype(f32)      # (1, Hm+Ha)
    w2 = jnp.block([[params['mw2'], jnp.zeros((Hm, Hm), f32)],
                    [jnp.zeros((Ha, Hm), f32), params['aw2']]]).astype(bf16)      # (Hm+Ha, 2*Hm)
    b2 = jnp.concatenate([params['mb2'], params['ab2']], axis=1).astype(f32)      # (1, 2*Hm)
    wih = params['wih'].astype(bf16)                                              # (Hm, 3D)
    whh = params['whh'].astype(bf16)                                              # (D, 3D)
    bih = params['bih'].astype(f32)                                               # (1, 3D)
    bhh = params['bhh'].astype(f32)                                               # (1, 3D)

    kernel = _make_kernel(N, D, E, Hm, Ha, TM)

    def full(shape):
        return pl.BlockSpec(shape, lambda k, _s=len(shape): (0,) * _s)

    call = pl.pallas_call(
        kernel,
        out_shape=jax.ShapeDtypeStruct((N, D), f32),
        grid=(n_tiles,),
        in_specs=[
            pl.BlockSpec((1, TM), lambda k: (0, k)),   # src endpoints (lane-dense)
            pl.BlockSpec((1, TM), lambda k: (0, k)),   # dst endpoints (lane-dense)
            pl.BlockSpec((TM, E), lambda k: (k, 0)),   # edge features tile
            full((N, D)),                              # node state (resident)
            full((D, Hm + Ha)), full((E, Hm + Ha)), full((1, Hm + Ha)),
            full((Hm + Ha, 2 * Hm)), full((1, 2 * Hm)),
            full((Hm, 3 * D)), full((D, 3 * D)),
            full((1, 3 * D)), full((1, 3 * D)),
        ],
        out_specs=full((N, D)),
        scratch_shapes=[pltpu.VMEM((N, Hm), f32)],     # scatter accumulator
        compiler_params=pltpu.CompilerParams(
            dimension_semantics=("arbitrary",),
            vmem_limit_bytes=64 * 1024 * 1024),
    )
    # TODO(synk): v7x megacore — add a leading "parallel" axis (per-core partial
    # (N,Hm) accumulators over the edge reduction, or batch independent graphs)
    # so the second TensorCore is not idle.

    state = node_feat.astype(f32)
    # NOTE: the PyTorch module owns per-layer parameter sets; this wrapper reuses
    # the single provided set for every layer (exact at the default num_layer=1).
    for ii in range(num_layer):
        if ii > 0:
            state = jax.nn.relu(state)
        for _ in range(num_prop):
            state = call(src_row, dst_row, edge_feat_p, state,
                         w1d, w1e, b1, w2, b2, wih, whh, bih, bhh)
    # has_residual=False, has_graph_output=False (module defaults)
    # TODO(synk): graph_output head (scatter-mean over graph_idx) not implemented (default off).
    return state


# ---------------------------------------------------------------------------
# pure-JAX f32 reference (mirrors the PyTorch math) for correctness checking
# ---------------------------------------------------------------------------
def ref_forward(node_feat, edge, edge_feat, p, num_layer=1, num_prop=1):
    D = node_feat.shape[1]
    mw1 = jnp.concatenate([p['mw1d'], p['mw1e']], axis=0)
    aw1 = jnp.concatenate([p['aw1d'], p['aw1e']], axis=0)

    def prop(state):
        sd = state[edge[:, 0]] - state[edge[:, 1]]
        ei = jnp.concatenate([sd, edge_feat], axis=1)
        h1 = jnp.maximum(ei @ mw1 + p['mb1'], 0.0)
        msg = h1 @ p['mw2'] + p['mb2']
        a1 = jnp.maximum(ei @ aw1 + p['ab1'], 0.0)
        att = jax.nn.sigmoid(a1 @ p['aw2'] + p['ab2'])
        msg = msg * att
        state_msg = jnp.zeros((state.shape[0], msg.shape[1]),
                              jnp.float32).at[edge[:, 1]].add(msg)
        gi = state_msg @ p['wih'] + p['bih']
        gh = state @ p['whh'] + p['bhh']
        r = jax.nn.sigmoid(gi[:, :D] + gh[:, :D])
        z = jax.nn.sigmoid(gi[:, D:2 * D] + gh[:, D:2 * D])
        n = jnp.tanh(gi[:, 2 * D:] + r * gh[:, 2 * D:])
        return (1.0 - z) * n + z * state

    state = node_feat
    for ii in range(num_layer):
        if ii > 0:
            state = jax.nn.relu(state)
        for _ in range(num_prop):
            state = prop(state)
    return state


def init_params(key, node_state_dim, msg_dim, edge_feat_dim, att_hidden_dim):
    ks = jax.random.split(key, 12)
    s = 0.1
    f = jnp.float32
    D, E, Hm, Ha = node_state_dim, edge_feat_dim, msg_dim, att_hidden_dim
    return {
        # msg MLP (first Linear split across [state_diff | edge_feat] inputs)
        'mw1d': s * jax.random.normal(ks[0], (D, Hm), f),
        'mw1e': s * jax.random.normal(ks[1], (E, Hm), f),
        'mb1':  s * jax.random.normal(ks[2], (1, Hm), f),
        'mw2':  s * jax.random.normal(ks[3], (Hm, Hm), f),
        'mb2':  s * jax.random.normal(ks[4], (1, Hm), f),
        # attention head
        'aw1d': s * jax.random.normal(ks[5], (D, Ha), f),
        'aw1e': s * jax.random.normal(ks[6], (E, Ha), f),
        'ab1':  s * jax.random.normal(ks[7], (1, Ha), f),
        'aw2':  s * jax.random.normal(ks[8], (Ha, Hm), f),
        'ab2':  s * jax.random.normal(ks[9], (1, Hm), f),
        # GRUCell (gate order r, z, n along the output axis)
        'wih':  s * jax.random.normal(ks[10], (Hm, 3 * D), f),
        'whh':  s * jax.random.normal(ks[11], (D, 3 * D), f),
        'bih':  jnp.zeros((1, 3 * D), f),
        'bhh':  jnp.zeros((1, 3 * D), f),
    }


if __name__ == "__main__":
    # small shapes: N=16 nodes, M=32 edges, node_state_dim=msg_dim=32,
    # edge_feat_dim=8, att_hidden_dim=128
    N, M = 16, 32
    node_state_dim = msg_dim = 32
    edge_feat_dim = 8
    att_hidden_dim = 128

    key = jax.random.PRNGKey(0)
    k_nf, k_e0, k_e1, k_ef, k_p = jax.random.split(key, 5)

    node_feat = jax.random.normal(k_nf, (N, node_state_dim), jnp.float32)
    edge = jnp.stack([jax.random.randint(k_e0, (M,), 0, N),
                      jax.random.randint(k_e1, (M,), 0, N)], axis=1)  # (M, 2)
    edge_feat = jax.random.normal(k_ef, (M, edge_feat_dim), jnp.float32)
    params = init_params(k_p, node_state_dim, msg_dim, edge_feat_dim,
                         att_hidden_dim)

    out = gnn_forward(node_feat, edge, edge_feat, params)
    out = jax.block_until_ready(out)

    ref = ref_forward(node_feat, edge, edge_feat, params)
    assert out.shape == (N, node_state_dim)
    assert bool(jnp.all(jnp.isfinite(out))), "non-finite output"
    # bf16 MXU operands with f32 accumulation vs. a pure-f32 reference
    assert bool(jnp.allclose(out, ref, atol=2e-2, rtol=2e-2)), "mismatch vs reference"

    print("KERNEL_OK")
</pallas_src>

<mosaic_0001>
module attributes {stable_mosaic.version = 11 : i64} {
  func.func @kernel(%arg0: i32, %arg1: memref<1x32xi32, #tpu.memory_space<vmem>>, %arg2: memref<1x32xi32, #tpu.memory_space<vmem>>, %arg3: memref<32x8xf32, #tpu.memory_space<vmem>>, %arg4: memref<16x32xf32, #tpu.memory_space<vmem>>, %arg5: memref<32x160xbf16, #tpu.memory_space<vmem>>, %arg6: memref<8x160xbf16, #tpu.memory_space<vmem>>, %arg7: memref<1x160xf32, #tpu.memory_space<vmem>>, %arg8: memref<160x64xbf16, #tpu.memory_space<vmem>>, %arg9: memref<1x64xf32, #tpu.memory_space<vmem>>, %arg10: memref<32x96xbf16, #tpu.memory_space<vmem>>, %arg11: memref<32x96xbf16, #tpu.memory_space<vmem>>, %arg12: memref<1x96xf32, #tpu.memory_space<vmem>>, %arg13: memref<1x96xf32, #tpu.memory_space<vmem>>, %arg14: memref<16x32xf32, #tpu.memory_space<vmem>>, %arg15: memref<16x32xf32, #tpu.memory_space<vmem>>) attributes {dimension_semantics = [#tpu.dimension_semantics<arbitrary>], iteration_bounds = array<i64: 1>, scalar_prefetch = 0 : i64, scratch_operands = 1 : i64, tpu.core_type = #tpu.core_type<tc>, window_params = [{transform_indices = @transform_0, window_bounds = array<i64: 1, 32>}, {transform_indices = @transform_1, window_bounds = array<i64: 1, 32>}, {transform_indices = @transform_2, window_bounds = array<i64: 32, 8>}, {pipeline_mode = #tpu.pipeline_mode<synchronous>, transform_indices = @transform_3, window_bounds = array<i64: 16, 32>}, {pipeline_mode = #tpu.pipeline_mode<synchronous>, transform_indices = @transform_4, window_bounds = array<i64: 32, 160>}, {pipeline_mode = #tpu.pipeline_mode<synchronous>, transform_indices = @transform_5, window_bounds = array<i64: 8, 160>}, {pipeline_mode = #tpu.pipeline_mode<synchronous>, transform_indices = @transform_6, window_bounds = array<i64: 1, 160>}, {pipeline_mode = #tpu.pipeline_mode<synchronous>, transform_indices = @transform_7, window_bounds = array<i64: 160, 64>}, {pipeline_mode = #tpu.pipeline_mode<synchronous>, transform_indices = @transform_8, window_bounds = array<i64: 1, 64>}, {pipeline_mode = #tpu.pipeline_mode<synchronous>, transform_indices = @transform_9, window_bounds = array<i64: 32, 96>}, {pipeline_mode = #tpu.pipeline_mode<synchronous>, transform_indices = @transform_10, window_bounds = array<i64: 32, 96>}, {pipeline_mode = #tpu.pipeline_mode<synchronous>, transform_indices = @transform_11, window_bounds = array<i64: 1, 96>}, {pipeline_mode = #tpu.pipeline_mode<synchronous>, transform_indices = @transform_12, window_bounds = array<i64: 1, 96>}, {pipeline_mode = #tpu.pipeline_mode<synchronous>, transform_indices = @transform_13, window_bounds = array<i64: 16, 32>}]} {
    %c0_i32 = arith.constant 0 : i32
    %0 = arith.cmpi eq, %arg0, %c0_i32 : i32
    %1 = arith.extui %0 : i1 to i32
    %c0_i32_0 = arith.constant 0 : i32
    %2 = arith.cmpi ne, %1, %c0_i32_0 : i32
    scf.if %2 {
      %cst_30 = arith.constant 0.000000e+00 : f32
      %55 = vector.broadcast %cst_30 : f32 to vector<16x32xf32>
      %c0_31 = arith.constant 0 : index
      %c0_32 = arith.constant 0 : index
      %56 = vector.load %arg15[%c0_31, %c0_32] : memref<16x32xf32, #tpu.memory_space<vmem>>, vector<16x32xf32>
      tpu.vector_store %arg15[%c0_31, %c0_32], %55 {strides = array<i32>} : memref<16x32xf32, #tpu.memory_space<vmem>>, vector<16x32xf32>,
    } else {
    }
    %3 = tpu.iota {dimensions = array<i32: 0>} : vector<16x32xi32>
    %c0 = arith.constant 0 : index
    %c0_1 = arith.constant 0 : index
    %4 = vector.load %arg1[%c0, %c0_1] : memref<1x32xi32, #tpu.memory_space<vmem>>, vector<1x32xi32>
    %5 = vector.broadcast %4 : vector<1x32xi32> to vector<16x32xi32>
    %6 = arith.cmpi eq, %3, %5 : vector<16x32xi32>
    %7 = arith.extui %6 : vector<16x32xi1> to vector<16x32xi32>
    %8 = arith.sitofp %7 : vector<16x32xi32> to vector<16x32xf32>
    %9 = arith.truncf %8 : vector<16x32xf32> to vector<16x32xbf16>
    %c0_2 = arith.constant 0 : index
    %c0_3 = arith.constant 0 : index
    %10 = vector.load %arg2[%c0_2, %c0_3] : memref<1x32xi32, #tpu.memory_space<vmem>>, vector<1x32xi32>
    %11 = vector.broadcast %10 : vector<1x32xi32> to vector<16x32xi32>
    %12 = arith.cmpi eq, %3, %11 : vector<16x32xi32>
    %13 = arith.extui %12 : vector<16x32xi1> to vector<16x32xi32>
    %14 = arith.sitofp %13 : vector<16x32xi32> to vector<16x32xf32>
    %15 = arith.truncf %14 : vector<16x32xf32> to vector<16x32xbf16>
    %16 = arith.subf %9, %15 : vector<16x32xbf16>
    %c0_4 = arith.constant 0 : index
    %c0_5 = arith.constant 0 : index
    %17 = vector.load %arg4[%c0_4, %c0_5] : memref<16x32xf32, #tpu.memory_space<vmem>>, vector<16x32xf32>
    %18 = arith.truncf %17 : vector<16x32xf32> to vector<16x32xbf16>
    %cst = arith.constant dense<0.000000e+00> : vector<32x32xf32>
    %19 = tpu.matmul %16, %18, %cst {dimension_numbers = #tpu.dot_dimension_numbers<[0], [0], [1], [1], [0, 1, 1, 1], [], []>} : vector<16x32xbf16>, vector<16x32xbf16>, vector<32x32xf32> -> vector<32x32xf32>
    %c0_6 = arith.constant 0 : index
    %c0_7 = arith.constant 0 : index
    %20 = vector.load %arg3[%c0_6, %c0_7] : memref<32x8xf32, #tpu.memory_space<vmem>>, vector<32x8xf32>
    %21 = arith.truncf %20 : vector<32x8xf32> to vector<32x8xbf16>
    %22 = arith.truncf %19 : vector<32x32xf32> to vector<32x32xbf16>
    %c0_8 = arith.constant 0 : index
    %c0_9 = arith.constant 0 : index
    %23 = vector.load %arg5[%c0_8, %c0_9] : memref<32x160xbf16, #tpu.memory_space<vmem>>, vector<32x160xbf16>
    %cst_10 = arith.constant dense<0.000000e+00> : vector<32x160xf32>
    %24 = tpu.matmul %22, %23, %cst_10 {dimension_numbers = #tpu.dot_dimension_numbers<[1], [0], [0], [1], [0, 0, 1, 1], [], []>} : vector<32x32xbf16>, vector<32x160xbf16>, vector<32x160xf32> -> vector<32x160xf32>
    %c0_11 = arith.constant 0 : index
    %c0_12 = arith.constant 0 : index
    %25 = vector.load %arg6[%c0_11, %c0_12] : memref<8x160xbf16, #tpu.memory_space<vmem>>, vector<8x160xbf16>
    %cst_13 = arith.constant dense<0.000000e+00> : vector<32x160xf32>
    %26 = tpu.matmul %21, %25, %cst_13 {dimension_numbers = #tpu.dot_dimension_numbers<[1], [0], [0], [1], [0, 0, 1, 1], [], []>} : vector<32x8xbf16>, vector<8x160xbf16>, vector<32x160xf32> -> vector<32x160xf32>
    %27 = arith.addf %24, %26 : vector<32x160xf32>
    %c0_14 = arith.constant 0 : index
    %c0_15 = arith.constant 0 : index
    %28 = vector.load %arg7[%c0_14, %c0_15] : memref<1x160xf32, #tpu.memory_space<vmem>>, vector<1x160xf32>
    %29 = vector.broadcast %28 : vector<1x160xf32> to vector<32x160xf32>
    %30 = arith.addf %27, %29 : vector<32x160xf32>
    %cst_16 = arith.constant 0.000000e+00 : f32
    %31 = vector.broadcast %cst_16 : f32 to vector<32x160xf32>
    %32 = arith.maximumf %30, %31 : vector<32x160xf32>
    %33 = arith.truncf %32 : vector<32x160xf32> to vector<32x160xbf16>
    %c0_17 = arith.constant 0 : index
    %c0_18 = arith.constant 0 : index
    %34 = vector.load %arg8[%c0_17, %c0_18] : memref<160x64xbf16, #tpu.memory_space<vmem>>, vector<160x64xbf16>
    %cst_19 = arith.constant dense<0.000000e+00> : vector<32x64xf32>
    %35 = tpu.matmul %33, %34, %cst_19 {dimension_numbers = #tpu.dot_dimension_numbers<[1], [0], [0], [1], [0, 0, 1, 1], [], []>} : vector<32x160xbf16>, vector<160x64xbf16>, vector<32x64xf32> -> vector<32x64xf32>
    %c0_20 = arith.constant 0 : index
    %c0_21 = arith.constant 0 : index
    %36 = vector.load %arg9[%c0_20, %c0_21] : memref<1x64xf32, #tpu.memory_space<vmem>>, vector<1x64xf32>
    %37 = vector.broadcast %36 : vector<1x64xf32> to vector<32x64xf32>
    %38 = arith.addf %35, %37 : vector<32x64xf32>
    %39 = vector.extract_strided_slice %38 {offsets = [0, 0], sizes = [32, 32], strides = [1, 1]} : vector<32x64xf32> to vector<32x32xf32>
    %40 = vector.extract_strided_slice %38 {offsets = [0, 32], sizes = [32, 32], strides = [1, 1]} : vector<32x64xf32> to vector<32x32xf32>
    %41 = arith.negf %40 : vector<32x32xf32>
    %42 = math.exp %41 : vector<32x32xf32>
    %cst_22 = arith.constant 1.000000e+00 : f32
    %43 = vector.broadcast %cst_22 : f32 to vector<32x32xf32>
    %44 = arith.addf %43, %42 : vector<32x32xf32>
    %45 = arith.divf %43, %44 : vector<32x32xf32>
    %46 = arith.mulf %39, %45 : vector<32x32xf32>
    %c0_23 = arith.constant 0 : index
    %c0_24 = arith.constant 0 : index
    %47 = vector.load %arg15[%c0_23, %c0_24] : memref<16x32xf32, #tpu.memory_space<vmem>>, vector<16x32xf32>
    %48 = arith.truncf %46 : vector<32x32xf32> to vector<32x32xbf16>
    %cst_25 = arith.constant dense<0.000000e+00> : vector<16x32xf32>
    %49 = tpu.matmul %15, %48, %cst_25 {dimension_numbers = #tpu.dot_dimension_numbers<[1], [0], [0], [1], [0, 0, 1, 1], [], []>} : vector<16x32xbf16>, vector<32x32xbf16>, vector<16x32xf32> -> vector<16x32xf32>
    %50 = arith.addf %47, %49 : vector<16x32xf32>
    %c0_26 = arith.constant 0 : index
    %c0_27 = arith.constant 0 : index
    %51 = vector.load %arg15[%c0_26, %c0_27] : memref<16x32xf32, #tpu.memory_space<vmem>>, vector<16x32xf32>
    tpu.vector_store %arg15[%c0_26, %c0_27], %50 {strides = array<i32>} : memref<16x32xf32, #tpu.memory_space<vmem>>, vector<16x32xf32>,
    %c0_i32_28 = arith.constant 0 : i32
    %52 = arith.cmpi eq, %arg0, %c0_i32_28 : i32
    %53 = arith.extui %52 : i1 to i32
    %c0_i32_29 = arith.constant 0 : i32
    %54 = arith.cmpi ne, %53, %c0_i32_29 : i32
    scf.if %54 {
      %c0_30 = arith.constant 0 : index
      %c0_31 = arith.constant 0 : index
      %55 = vector.load %arg4[%c0_30, %c0_31] : memref<16x32xf32, #tpu.memory_space<vmem>>, vector<16x32xf32>
      %c0_32 = arith.constant 0 : index
      %c0_33 = arith.constant 0 : index
      %56 = vector.load %arg15[%c0_32, %c0_33] : memref<16x32xf32, #tpu.memory_space<vmem>>, vector<16x32xf32>
      %57 = arith.truncf %56 : vector<16x32xf32> to vector<16x32xbf16>
      %c0_34 = arith.constant 0 : index
      %c0_35 = arith.constant 0 : index
      %58 = vector.load %arg10[%c0_34, %c0_35] : memref<32x96xbf16, #tpu.memory_space<vmem>>, vector<32x96xbf16>
      %cst_36 = arith.constant dense<0.000000e+00> : vector<16x96xf32>
      %59 = tpu.matmul %57, %58, %cst_36 {dimension_numbers = #tpu.dot_dimension_numbers<[1], [0], [0], [1], [0, 0, 1, 1], [], []>} : vector<16x32xbf16>, vector<32x96xbf16>, vector<16x96xf32> -> vector<16x96xf32>
      %c0_37 = arith.constant 0 : index
      %c0_38 = arith.constant 0 : index
      %60 = vector.load %arg12[%c0_37, %c0_38] : memref<1x96xf32, #tpu.memory_space<vmem>>, vector<1x96xf32>
      %61 = vector.broadcast %60 : vector<1x96xf32> to vector<16x96xf32>
      %62 = arith.addf %59, %61 : vector<16x96xf32>
      %c0_39 = arith.constant 0 : index
      %c0_40 = arith.constant 0 : index
      %63 = vector.load %arg11[%c0_39, %c0_40] : memref<32x96xbf16, #tpu.memory_space<vmem>>, vector<32x96xbf16>
      %cst_41 = arith.constant dense<0.000000e+00> : vector<16x96xf32>
      %64 = tpu.matmul %18, %63, %cst_41 {dimension_numbers = #tpu.dot_dimension_numbers<[1], [0], [0], [1], [0, 0, 1, 1], [], []>} : vector<16x32xbf16>, vector<32x96xbf16>, vector<16x96xf32> -> vector<16x96xf32>
      %c0_42 = arith.constant 0 : index
      %c0_43 = arith.constant 0 : index
      %65 = vector.load %arg13[%c0_42, %c0_43] : memref<1x96xf32, #tpu.memory_space<vmem>>, vector<1x96xf32>
      %66 = vector.broadcast %65 : vector<1x96xf32> to vector<16x96xf32>
      %67 = arith.addf %64, %66 : vector<16x96xf32>
      %68 = vector.extract_strided_slice %62 {offsets = [0, 0], sizes = [16, 32], strides = [1, 1]} : vector<16x96xf32> to vector<16x32xf32>
      %69 = vector.extract_strided_slice %67 {offsets = [0, 0], sizes = [16, 32], strides = [1, 1]} : vector<16x96xf32> to vector<16x32xf32>
      %70 = arith.addf %68, %69 : vector<16x32xf32>
      %71 = arith.negf %70 : vector<16x32xf32>
      %72 = math.exp %71 : vector<16x32xf32>
      %cst_44 = arith.constant 1.000000e+00 : f32
      %73 = vector.broadcast %cst_44 : f32 to vector<16x32xf32>
      %74 = arith.addf %73, %72 : vector<16x32xf32>
      %75 = arith.divf %73, %74 : vector<16x32xf32>
      %76 = vector.extract_strided_slice %62 {offsets = [0, 32], sizes = [16, 32], strides = [1, 1]} : vector<16x96xf32> to vector<16x32xf32>
      %77 = vector.extract_strided_slice %67 {offsets = [0, 32], sizes = [16, 32], strides = [1, 1]} : vector<16x96xf32> to vector<16x32xf32>
      %78 = arith.addf %76, %77 : vector<16x32xf32>
      %79 = arith.negf %78 : vector<16x32xf32>
      %80 = math.exp %79 : vector<16x32xf32>
      %cst_45 = arith.constant 1.000000e+00 : f32
      %81 = vector.broadcast %cst_45 : f32 to vector<16x32xf32>
      %82 = arith.addf %81, %80 : vector<16x32xf32>
      %83 = arith.divf %81, %82 : vector<16x32xf32>
      %84 = vector.extract_strided_slice %62 {offsets = [0, 64], sizes = [16, 32], strides = [1, 1]} : vector<16x96xf32> to vector<16x32xf32>
      %85 = vector.extract_strided_slice %67 {offsets = [0, 64], sizes = [16, 32], strides = [1, 1]} : vector<16x96xf32> to vector<16x32xf32>
      %86 = arith.mulf %75, %85 : vector<16x32xf32>
      %87 = arith.addf %84, %86 : vector<16x32xf32>
      %88 = math.tanh %87 : vector<16x32xf32>
      %cst_46 = arith.constant 1.000000e+00 : f32
      %89 = vector.broadcast %cst_46 : f32 to vector<16x32xf32>
      %90 = arith.subf %89, %83 : vector<16x32xf32>
      %91 = arith.mulf %90, %88 : vector<16x32xf32>
      %92 = arith.mulf %83, %55 : vector<16x32xf32>
      %93 = arith.addf %91, %92 : vector<16x32xf32>
      %c0_47 = arith.constant 0 : index
      %c0_48 = arith.constant 0 : index
      %94 = vector.load %arg14[%c0_47, %c0_48] : memref<16x32xf32, #tpu.memory_space<vmem>>, vector<16x32xf32>
      tpu.vector_store %arg14[%c0_47, %c0_48], %93 {strides = array<i32>} : memref<16x32xf32, #tpu.memory_space<vmem>>, vector<16x32xf32>,
    } else {
    }
    return
  }
  func.func @transform_0(%arg0: i32) -> (i32, i32) {
    %c0_i32 = arith.constant 0 : i32
    %c0_i32_0 = arith.constant 0 : i32
    return %c0_i32, %arg0 : i32, i32
  }
  func.func @transform_1(%arg0: i32) -> (i32, i32) {
    %c0_i32 = arith.constant 0 : i32
    %c0_i32_0 = arith.constant 0 : i32
    return %c0_i32, %arg0 : i32, i32
  }
  func.func @transform_2(%arg0: i32) -> (i32, i32) {
    %c0_i32 = arith.constant 0 : i32
    %c0_i32_0 = arith.constant 0 : i32
    return %arg0, %c0_i32 : i32, i32
  }
  func.func @transform_3(%arg0: i32) -> (i32, i32) {
    %c0_i32 = arith.constant 0 : i32
    %c0_i32_0 = arith.constant 0 : i32
    %c0_i32_1 = arith.constant 0 : i32
    return %c0_i32, %c0_i32_0 : i32, i32
  }
  func.func @transform_4(%arg0: i32) -> (i32, i32) {
    %c0_i32 = arith.constant 0 : i32
    %c0_i32_0 = arith.constant 0 : i32
    %c0_i32_1 = arith.constant 0 : i32
    return %c0_i32, %c0_i32_0 : i32, i32
  }
  func.func @transform_5(%arg0: i32) -> (i32, i32) {
    %c0_i32 = arith.constant 0 : i32
    %c0_i32_0 = arith.constant 0 : i32
    %c0_i32_1 = arith.constant 0 : i32
    return %c0_i32, %c0_i32_0 : i32, i32
  }
  func.func @transform_6(%arg0: i32) -> (i32, i32) {
    %c0_i32 = arith.constant 0 : i32
    %c0_i32_0 = arith.constant 0 : i32
    %c0_i32_1 = arith.constant 0 : i32
    return %c0_i32, %c0_i32_0 : i32, i32
  }
  func.func @transform_7(%arg0: i32) -> (i32, i32) {
    %c0_i32 = arith.constant 0 : i32
    %c0_i32_0 = arith.constant 0 : i32
    %c0_i32_1 = arith.constant 0 : i32
    return %c0_i32, %c0_i32_0 : i32, i32
  }
  func.func @transform_8(%arg0: i32) -> (i32, i32) {
    %c0_i32 = arith.constant 0 : i32
    %c0_i32_0 = arith.constant 0 : i32
    %c0_i32_1 = arith.constant 0 : i32
    return %c0_i32, %c0_i32_0 : i32, i32
  }
  func.func @transform_9(%arg0: i32) -> (i32, i32) {
    %c0_i32 = arith.constant 0 : i32
    %c0_i32_0 = arith.constant 0 : i32
    %c0_i32_1 = arith.constant 0 : i32
    return %c0_i32, %c0_i32_0 : i32, i32
  }
  func.func @transform_10(%arg0: i32) -> (i32, i32) {
    %c0_i32 = arith.constant 0 : i32
    %c0_i32_0 = arith.constant 0 : i32
    %c0_i32_1 = arith.constant 0 : i32
    return %c0_i32, %c0_i32_0 : i32, i32
  }
  func.func @transform_11(%arg0: i32) -> (i32, i32) {
    %c0_i32 = arith.constant 0 : i32
    %c0_i32_0 = arith.constant 0 : i32
    %c0_i32_1 = arith.constant 0 : i32
    return %c0_i32, %c0_i32_0 : i32, i32
  }
  func.func @transform_12(%arg0: i32) -> (i32, i32) {
    %c0_i32 = arith.constant 0 : i32
    %c0_i32_0 = arith.constant 0 : i32
    %c0_i32_1 = arith.constant 0 : i32
    return %c0_i32, %c0_i32_0 : i32, i32
  }
  func.func @transform_13(%arg0: i32) -> (i32, i32) {
    %c0_i32 = arith.constant 0 : i32
    %c0_i32_0 = arith.constant 0 : i32
    %c0_i32_1 = arith.constant 0 : i32
    return %c0_i32, %c0_i32_0 : i32, i32
  }
}

</mosaic_0001>

<bundles_post_ra>
// kernel: gnn_forward.1
= control target key start
LH: loop header
LB: loop body
LE: loop exit
PB: predicated region body
PF: predicated region fallthrough
CT: control target
= control target key end

     0   :  { %18 = vsyncpa [#allocation4], 0  ;;  %s1861_s0 = inlined_call_operand.hbm [shape: s32[1,32], index: 0, kind: input, shape index: {}]   ;;  %s1862_s1 = inlined_call_operand.hbm [shape: s32[1,32], index: 1, kind: input, shape index: {}]   ;;  %s1863_s2 = inlined_call_operand.hbm [shape: f32[32,8], index: 2, kind: input, shape index: {}]   ;;  %s1864_s3 = inlined_call_operand.hbm [shape: f32[16,32], index: 3, kind: input, shape index: {}]   ;;  %s1865_s4 = inlined_call_operand.hbm [shape: bf16[32,160], index: 4, kind: input, shape index: {}]   ;;  %s1866_s5 = inlined_call_operand.hbm [shape: bf16[8,160], index: 5, kind: input, shape index: {}]   ;;  %s1867_s6 = inlined_call_operand.hbm [shape: f32[1,160], index: 6, kind: input, shape index: {}]   ;;  %s1868_s7 = inlined_call_operand.hbm [shape: bf16[160,64], index: 7, kind: input, shape index: {}]   ;;  %s1869_s8 = inlined_call_operand.hbm [shape: f32[1,64], index: 8, kind: input, shape index: {}]   ;;  %s1870_s9 = inlined_call_operand.hbm [shape: bf16[32,96], index: 9, kind: input, shape index: {}]   ;;  %s1871_s10 = inlined_call_operand.hbm [shape: bf16[32,96], index: 10, kind: input, shape index: {}]   ;;  %s1872_s11 = inlined_call_operand.hbm [shape: f32[1,96], index: 11, kind: input, shape index: {}]   ;;  %s1873_s12 = inlined_call_operand.hbm [shape: f32[1,96], index: 12, kind: input, shape index: {}]   ;;  %s1874_s13 = inlined_call_operand.hbm [shape: f32[16,32], index: 13, kind: output, shape index: {}]  }
   0x1   :  { %19 = vsyncpa [#allocation7], 0 }
   0x2   :  { %20 = vsyncpa [#allocation10], 0 }
   0x3   :  { %21 = vsyncpa [#allocation13], 0 }
   0x4   :  { %22 = vsyncpa [#allocation16], 0 }
   0x5   :  { %23 = vsyncpa [#allocation19], 0 }
   0x6   :  { %24 = vsyncpa [#allocation22], 0 }
   0x7   :  { %25 = vsyncpa [#allocation5], 0  ;;  %s1482_s25 = smov [#allocation6]   ;;  %s1158_s29 = scalar_lea.hbm %s1862_s1, 16 }
   0x8   :  { %s42_s26 = sshll.u32 %s1482_s25, 4  ;;  %p1159_p0 = scmp.ne.s32.totalorder %s1862_s1, %s1158_s29  ;;  %s43_s26 = int_to_ptr.vmem [resolvable:$true] %s42_s26 }
   0x9   :  { %p1162_p1 = scmp.lt.u32.totalorder %s1158_s29, %s1862_s1 }
   0xb   :  { %p1164_p2 = pnand %p1162_p1, %p1159_p0 }
   0xd   :  { %1167 = shalt.err (!%p1164_p2)
}
   0xe   :  { %s1168_s17 = scalar_lea.vmem %s43_s26, 16  ;;  %s1172_s18 = scalar_lea.vmem %s43_s26, 32 }
   0xf   :  { %p1169_p3 = scmp.ne.s32.totalorder %s43_s26, %s1168_s17  ;;  %p1173_p4 = scmp.lt.s32.totalorder %s43_s26, %s43_s26 }
  0x10   :  { %p1174_p5 = scmp.lt.s32.totalorder %s1172_s18, %s1168_s17 }
  0x12   :  { %p1175_p6 = por %p1174_p5, %p1173_p4 }
  0x14   :  { %p1176_p7 = pnand %p1175_p6, %p1169_p3 }
  0x16   :  { %1179 = shalt.err (!%p1176_p7)
}
  0x17   :  { %45 = dma.hbm_to_vmem [thread:$0]  %s1862_s1, 16, %s43_s26, [#allocation7]  }
  0x18   :  { %s1483_s21 = smov [#allocation9]   ;;  %s1484_s23 = smov [#allocation12]  }
  0x19   :  { %s63_s22 = sshll.u32 %s1483_s21, 4  ;;  %s88_s24 = sshll.u32 %s1484_s23, 4  ;;  %s64_s22 = int_to_ptr.vmem [resolvable:$true] %s63_s22  ;;  %s89_s24 = int_to_ptr.vmem [resolvable:$true] %s88_s24 }
  0x1a   :  { %s1180_s28 = scalar_lea.hbm %s1864_s3, 256 }
  0x1b   :  { %p1181_p8 = scmp.ne.s32.totalorder %s1864_s3, %s1180_s28  ;;  %p1184_p9 = scmp.lt.u32.totalorder %s1180_s28, %s1864_s3 }
  0x1d   :  { %p1186_p10 = pnand %p1184_p9, %p1181_p8 }
  0x1f   :  { %1189 = shalt.err (!%p1186_p10)
}
  0x20   :  { %s1190_s1 = scalar_lea.vmem %s64_s22, 256  ;;  %p1195_p12 = scmp.lt.s32.totalorder %s64_s22, %s64_s22 }
  0x21   :  { %p1191_p11 = scmp.ne.s32.totalorder %s64_s22, %s1190_s1  ;;  %p1196_p13 = scmp.lt.s32.totalorder %s1190_s1, %s1190_s1 }
  0x23   :  { %p1197_p0 = por %p1196_p13, %p1195_p12 }
  0x25   :  { %p1198_p1 = pnand %p1197_p0, %p1191_p11 }
  0x27   :  { %1201 = shalt.err (!%p1198_p1)
}
  0x28   :  { %s1485_s26 = smov 128   ;;  %s1486_s16 = smov 8  }
  0x29   :  { %69 = dma.hbm_to_vmem [thread:$0]  %s1864_s3, 256, %s64_s22, [#allocation10], %s1485_s26, %s1485_s26, %s1486_s16  }
  0x2a   :  { %s1202_s21 = scalar_lea.hbm %s1866_s5, 128 }
  0x2b   :  { %p1203_p2 = scmp.ne.s32.totalorder %s1866_s5, %s1202_s21  ;;  %p1206_p3 = scmp.lt.u32.totalorder %s1202_s21, %s1866_s5 }
  0x2d   :  { %p1208_p4 = pnand %p1206_p3, %p1203_p2 }
  0x2f   :  { %1211 = shalt.err (!%p1208_p4)
}
  0x30   :  { %s1212_s29 = scalar_lea.vmem %s89_s24, 128  ;;  %p1217_p6 = scmp.lt.s32.totalorder %s89_s24, %s89_s24 }
  0x31   :  { %p1213_p5 = scmp.ne.s32.totalorder %s89_s24, %s1212_s29  ;;  %p1218_p7 = scmp.lt.s32.totalorder %s1212_s29, %s1212_s29 }
  0x33   :  { %p1219_p8 = por %p1218_p7, %p1217_p6 }
  0x35   :  { %p1220_p9 = pnand %p1219_p8, %p1213_p5 }
  0x37   :  { %1223 = shalt.err (!%p1220_p9)
}
  0x38   :  { %91 = dma.hbm_to_vmem [thread:$0]  %s1866_s5, 128, %s89_s24, [#allocation13]  }
  0x39   :  { %s1487_s30 = smov [#allocation15]   ;;  %s1224_s17 = scalar_lea.hbm %s1868_s7, 1280 }
  0x3a   :  { %s107_s14 = sshll.u32 %s1487_s30, 4  ;;  %p1225_p10 = scmp.ne.s32.totalorder %s1868_s7, %s1224_s17  ;;  %s108_s14 = int_to_ptr.vmem [resolvable:$true] %s107_s14 }
  0x3b   :  { %p1228_p11 = scmp.lt.u32.totalorder %s1224_s17, %s1868_s7 }
  0x3d   :  { %p1230_p12 = pnand %p1228_p11, %p1225_p10 }
  0x3f   :  { %1233 = shalt.err (!%p1230_p12)
}
  0x40   :  { %s1234_s23 = scalar_lea.vmem %s108_s14, 1280  ;;  %p1239_p0 = scmp.lt.s32.totalorder %s108_s14, %s108_s14 }
  0x41   :  { %p1235_p13 = scmp.ne.s32.totalorder %s108_s14, %s1234_s23  ;;  %p1240_p1 = scmp.lt.s32.totalorder %s1234_s23, %s1234_s23 }
  0x43   :  { %p1241_p2 = por %p1240_p1, %p1239_p0 }
  0x45   :  { %p1242_p3 = pnand %p1241_p2, %p1235_p13 }
  0x47   :  { %1245 = shalt.err (!%p1242_p3)
}
  0x48   :  { %s1488_s5 = smov 64   ;;  %s1489_s24 = smov 4  }
  0x49   :  { %113 = dma.hbm_to_vmem [thread:$0]  %s1868_s7, 1280, %s108_s14, [#allocation16], %s1488_s5, %s1488_s5, %s1489_s24  }
  0x4a   :  { %s1490_s28 = smov [#allocation18]   ;;  %s1491_s3 = smov [#allocation21]  }
  0x4b   :  { %s129_s29 = sshll.u32 %s1490_s28, 4  ;;  %s154_s22 = sshll.u32 %s1491_s3, 4  ;;  %s130_s29 = int_to_ptr.vmem [resolvable:$true] %s129_s29  ;;  %s155_s22 = int_to_ptr.vmem [resolvable:$true] %s154_s22 }
  0x4c   :  { %s1246_s1 = scalar_lea.hbm %s1870_s9, 256 }
  0x4d   :  { %p1247_p4 = scmp.ne.s32.totalorder %s1870_s9, %s1246_s1  ;;  %p1250_p5 = scmp.lt.u32.totalorder %s1246_s1, %s1870_s9 }
  0x4f   :  { %p1252_p6 = pnand %p1250_p5, %p1247_p4 }
  0x51   :  { %1255 = shalt.err (!%p1252_p6)
}
  0x52   :  { %s1256_s7 = scalar_lea.vmem %s130_s29, 256  ;;  %p1261_p8 = scmp.lt.s32.totalorder %s130_s29, %s130_s29 }
  0x53   :  { %p1257_p7 = scmp.ne.s32.totalorder %s130_s29, %s1256_s7  ;;  %p1262_p9 = scmp.lt.s32.totalorder %s1256_s7, %s1256_s7 }
  0x55   :  { %p1263_p10 = por %p1262_p9, %p1261_p8 }
  0x57   :  { %p1264_p11 = pnand %p1263_p10, %p1257_p7 }
  0x59   :  { %1267 = shalt.err (!%p1264_p11)
}
  0x5a   :  { %135 = dma.hbm_to_vmem [thread:$0]  %s1870_s9, 256, %s130_s29, [#allocation19], %s1488_s5, %s1488_s5, %s1489_s24  }
  0x5b   :  { %s1268_s27 = scalar_lea.hbm %s1872_s11, 16 }
  0x5c   :  { %p1269_p12 = scmp.ne.s32.totalorder %s1872_s11, %s1268_s27  ;;  %p1272_p13 = scmp.lt.u32.totalorder %s1268_s27, %s1872_s11 }
  0x5e   :  { %p1274_p0 = pnand %p1272_p13, %p1269_p12 }
  0x60   :  { %1277 = shalt.err (!%p1274_p0)
}
  0x61   :  { %s1278_s1 = scalar_lea.vmem %s155_s22, 16  ;;  %s1282_s17 = scalar_lea.vmem %s155_s22, 32 }
  0x62   :  { %p1279_p1 = scmp.ne.s32.totalorder %s155_s22, %s1278_s1  ;;  %p1283_p2 = scmp.lt.s32.totalorder %s155_s22, %s155_s22 }
  0x63   :  { %p1284_p3 = scmp.lt.s32.totalorder %s1282_s17, %s1278_s1 }
  0x65   :  { %p1285_p4 = por %p1284_p3, %p1283_p2 }
  0x67   :  { %p1286_p5 = pnand %p1285_p4, %p1279_p1 }
  0x69   :  { %1289 = shalt.err (!%p1286_p5)
}
  0x6a   :  { %157 = dma.hbm_to_vmem [thread:$0]  %s1872_s11, 16, %s155_s22, [#allocation22]  }
  0x6b   :  { %s1492_s18 = smov [#allocation3]   ;;  %s1493_s20 = smov [#allocation8]  }
  0x6c   :  { %s32_s19 = sshll.u32 %s1492_s18, 4  ;;  %s51_s7 = sshll.u32 %s1493_s20, 4  ;;  %s33_s19 = int_to_ptr.vmem [resolvable:$true] %s32_s19  ;;  %s1656_s7 = int_to_ptr.vmem [resolvable:$true] %s51_s7 }
  0x6d   :  { %s1290_s23 = scalar_lea.hbm %s1861_s0, 16 }
  0x6e   :  { %p1291_p6 = scmp.ne.s32.totalorder %s1861_s0, %s1290_s23  ;;  %p1294_p7 = scmp.lt.u32.totalorder %s1290_s23, %s1861_s0 }
  0x70   :  { %p1296_p8 = pnand %p1294_p7, %p1291_p6 }
  0x72   :  { %1299 = shalt.err (!%p1296_p8)
}
  0x73   :  { %s1300_s11 = scalar_lea.vmem %s33_s19, 16  ;;  %s1304_s22 = scalar_lea.vmem %s33_s19, 32 }
  0x74   :  { %p1301_p9 = scmp.ne.s32.totalorder %s33_s19, %s1300_s11  ;;  %p1305_p10 = scmp.lt.s32.totalorder %s33_s19, %s33_s19 }
  0x75   :  { %p1306_p11 = scmp.lt.s32.totalorder %s1304_s22, %s1300_s11 }
  0x77   :  { %p1307_p12 = por %p1306_p11, %p1305_p10 }
  0x79   :  { %p1308_p13 = pnand %p1307_p12, %p1301_p9 }
  0x7b   :  { %1311 = shalt.err (!%p1308_p13)
}
  0x7c   :  { %35 = dma.hbm_to_vmem [thread:$0]  %s1861_s0, 16, %s33_s19, [#allocation4]  }
  0x7d   :  { %s1312_s9 = scalar_lea.hbm %s1863_s2, 512 }
  0x7e   :  { %p1313_p0 = scmp.ne.s32.totalorder %s1863_s2, %s1312_s9  ;;  %p1316_p1 = scmp.lt.u32.totalorder %s1312_s9, %s1863_s2 }
  0x80   :  { %p1318_p2 = pnand %p1316_p1, %p1313_p0 }
  0x82   :  { %1321 = shalt.err (!%p1318_p2)
}
  0x83   :  { %s1322_s21 = scalar_lea.vmem %s1656_s7, 512  ;;  %p1327_p4 = scmp.lt.s32.totalorder %s1656_s7, %s1656_s7 }
  0x84   :  { %p1323_p3 = scmp.ne.s32.totalorder %s1656_s7, %s1322_s21  ;;  %p1328_p5 = scmp.lt.s32.totalorder %s1322_s21, %s1322_s21 }
  0x86   :  { %p1329_p6 = por %p1328_p5, %p1327_p4 }
  0x88   :  { %p1330_p7 = pnand %p1329_p6, %p1323_p3 }
  0x8a   :  { %1333 = shalt.err (!%p1330_p7)
}
  0x8b   :  { %57 = dma.hbm_to_vmem [thread:$0]  %s1863_s2, 512, %s1656_s7, [#allocation7], %s1485_s26, %s1485_s26, %s1486_s16  }
  0x8c   :  { %s1494_s23 = smov [#allocation11]   ;;  %s1495_s27 = smov [#allocation14]  }
  0x8d   :  { %s75_s25 = sshll.u32 %s1494_s23, 4  ;;  %s98_s28 = sshll.u32 %s1495_s27, 4  ;;  %s76_s25 = int_to_ptr.vmem [resolvable:$true] %s75_s25  ;;  %s99_s28 = int_to_ptr.vmem [resolvable:$true] %s98_s28 }
  0x8e   :  { %s1334_s22 = scalar_lea.hbm %s1865_s4, 512 }
  0x8f   :  { %p1335_p8 = scmp.ne.s32.totalorder %s1865_s4, %s1334_s22  ;;  %p1338_p9 = scmp.lt.u32.totalorder %s1334_s22, %s1865_s4 }
  0x91   :  { %p1340_p10 = pnand %p1338_p9, %p1335_p8 }
  0x93   :  { %1343 = shalt.err (!%p1340_p10)
}
  0x94   :  { %s1344_s2 = scalar_lea.vmem %s76_s25, 512  ;;  %p1349_p12 = scmp.lt.s32.totalorder %s76_s25, %s76_s25 }
  0x95   :  { %p1345_p11 = scmp.ne.s32.totalorder %s76_s25, %s1344_s2  ;;  %p1350_p13 = scmp.lt.s32.totalorder %s1344_s2, %s1344_s2 }
  0x97   :  { %p1351_p0 = por %p1350_p13, %p1349_p12 }
  0x99   :  { %p1352_p1 = pnand %p1351_p0, %p1345_p11 }
  0x9b   :  { %1355 = shalt.err (!%p1352_p1)
}
  0x9c   :  { %81 = dma.hbm_to_vmem [thread:$0]  %s1865_s4, 512, %s76_s25, [#allocation10], %s1485_s26, %s1485_s26, %s1486_s16  }
  0x9d   :  { %s1356_s20 = scalar_lea.hbm %s1867_s6, 32 }
  0x9e   :  { %p1357_p2 = scmp.ne.s32.totalorder %s1867_s6, %s1356_s20  ;;  %p1360_p3 = scmp.lt.u32.totalorder %s1356_s20, %s1867_s6 }
  0xa0   :  { %p1362_p4 = pnand %p1360_p3, %p1357_p2 }
  0xa2   :  { %1365 = shalt.err (!%p1362_p4)
}
  0xa3   :  { %s1366_s23 = scalar_lea.vmem %s99_s28, 32  ;;  %p1371_p6 = scmp.lt.s32.totalorder %s99_s28, %s99_s28 }
  0xa4   :  { %p1367_p5 = scmp.ne.s32.totalorder %s99_s28, %s1366_s23  ;;  %p1372_p7 = scmp.lt.s32.totalorder %s1366_s23, %s1366_s23 }
  0xa6   :  { %p1373_p8 = por %p1372_p7, %p1371_p6 }
  0xa8   :  { %p1374_p9 = pnand %p1373_p8, %p1367_p5 }
  0xaa   :  { %1377 = shalt.err (!%p1374_p9)
}
  0xab   :  { %101 = dma.hbm_to_vmem [thread:$0]  %s1867_s6, 32, %s99_s28, [#allocation13]  }
  0xac   :  { %s1496_s27 = smov [#allocation17]   ;;  %s1497_s11 = smov [#allocation20]  }
  0xad   :  { %s120_s3 = sshll.u32 %s1496_s27, 4  ;;  %s141_s22 = sshll.u32 %s1497_s11, 4  ;;  %s121_s3 = int_to_ptr.vmem [resolvable:$true] %s120_s3  ;;  %s1717_s22 = int_to_ptr.vmem [resolvable:$true] %s141_s22 }
  0xae   :  { %s1378_s1 = scalar_lea.hbm %s1869_s8, 16 }
  0xaf   :  { %p1379_p10 = scmp.ne.s32.totalorder %s1869_s8, %s1378_s1  ;;  %p1382_p11 = scmp.lt.u32.totalorder %s1378_s1, %s1869_s8 }
  0xb1   :  { %p1384_p12 = pnand %p1382_p11, %p1379_p10 }
  0xb3   :  { %1387 = shalt.err (!%p1384_p12)
}
  0xb4   :  { %s1388_s6 = scalar_lea.vmem %s121_s3, 16  ;;  %s1392_s28 = scalar_lea.vmem %s121_s3, 32 }
  0xb5   :  { %p1389_p13 = scmp.ne.s32.totalorder %s121_s3, %s1388_s6  ;;  %p1393_p0 = scmp.lt.s32.totalorder %s121_s3, %s121_s3 }
  0xb6   :  { %p1394_p1 = scmp.lt.s32.totalorder %s1392_s28, %s1388_s6 }
  0xb8   :  { %p1395_p2 = por %p1394_p1, %p1393_p0 }
  0xba   :  { %p1396_p3 = pnand %p1395_p2, %p1389_p13 }
  0xbc   :  { %1399 = shalt.err (!%p1396_p3)
}
  0xbd   :  { %123 = dma.hbm_to_vmem [thread:$0]  %s1869_s8, 16, %s121_s3, [#allocation16]  }
  0xbe   :  { %s1400_s21 = scalar_lea.hbm %s1871_s10, 256 }
  0xbf   :  { %p1401_p4 = scmp.ne.s32.totalorder %s1871_s10, %s1400_s21  ;;  %p1404_p5 = scmp.lt.u32.totalorder %s1400_s21, %s1871_s10 }
  0xc1   :  { %p1406_p6 = pnand %p1404_p5, %p1401_p4 }
  0xc3   :  { %1409 = shalt.err (!%p1406_p6)
}
  0xc4   :  { %s1410_s25 = scalar_lea.vmem %s1717_s22, 256  ;;  %p1415_p8 = scmp.lt.s32.totalorder %s1717_s22, %s1717_s22 }
  0xc5   :  { %p1411_p7 = scmp.ne.s32.totalorder %s1717_s22, %s1410_s25  ;;  %p1416_p9 = scmp.lt.s32.totalorder %s1410_s25, %s1410_s25 }
  0xc7   :  { %p1417_p10 = por %p1416_p9, %p1415_p8 }
  0xc9   :  { %p1418_p11 = pnand %p1417_p10, %p1411_p7 }
  0xcb   :  { %1421 = shalt.err (!%p1418_p11)
}
  0xcc   :  { %147 = dma.hbm_to_vmem [thread:$0]  %s1871_s10, 256, %s1717_s22, [#allocation19], %s1488_s5, %s1488_s5, %s1489_s24  }
  0xcd   :  { %s1498_s3 = smov [#allocation23]   ;;  %s1422_s1 = scalar_lea.hbm %s1873_s12, 16 }
  0xce   :  { %s164_s11 = sshll.u32 %s1498_s3, 4  ;;  %p1423_p12 = scmp.ne.s32.totalorder %s1873_s12, %s1422_s1  ;;  %s165_s11 = int_to_ptr.vmem [resolvable:$true] %s164_s11 }
  0xcf   :  { %p1426_p13 = scmp.lt.u32.totalorder %s1422_s1, %s1873_s12 }
  0xd1   :  { %p1428_p0 = pnand %p1426_p13, %p1423_p12 }
  0xd3   :  { %1431 = shalt.err (!%p1428_p0)
}
  0xd4   :  { %s1432_s6 = scalar_lea.vmem %s165_s11, 16  ;;  %s1436_s10 = scalar_lea.vmem %s165_s11, 32 }
  0xd5   :  { %p1433_p1 = scmp.ne.s32.totalorder %s165_s11, %s1432_s6  ;;  %p1437_p2 = scmp.lt.s32.totalorder %s165_s11, %s165_s11 }
  0xd6   :  { %p1438_p3 = scmp.lt.s32.totalorder %s1436_s10, %s1432_s6 }
  0xd8   :  { %p1439_p4 = por %p1438_p3, %p1437_p2 }
  0xda   :  { %p1440_p5 = pnand %p1439_p4, %p1433_p1 }
  0xdc   :  { %1443 = shalt.err (!%p1440_p5)
}
  0xdd   :  { %167 = dma.hbm_to_vmem [thread:$0]  %s1873_s12, 16, %s165_s11, [#allocation22]  }
  0xde   :  { %1466 = dma.done.wait [#allocation4], 16  }
  0xdf   :  { %1467 = vsyncadd [#allocation4], 4294967280 }
  0xe0   :  { %1468 = dma.done.wait [#allocation7], 528  }
  0xe1   :  { %1469 = vsyncadd [#allocation7], 4294966768 }
  0xe2   :  { %1470 = dma.done.wait [#allocation10], 768  }
  0xe3   :  { %1471 = vsyncadd [#allocation10], 4294966528 }
  0xe4   :  { %1472 = dma.done.wait [#allocation13], 160  }
  0xe5   :  { %1473 = vsyncadd [#allocation13], 4294967136 }
  0xe6   :  { %1474 = dma.done.wait [#allocation16], 1296  }
  0xe7   :  { %1475 = vsyncadd [#allocation16], 4294966000 }
  0xe8   :  { %1476 = dma.done.wait [#allocation19], 512  }
  0xe9   :  { %1477 = vsyncadd [#allocation19], 4294966784 }
  0xea   :  { %1478 = dma.done.wait [#allocation22], 32  }
  0xeb   :  { %1479 = vsyncadd [#allocation22], 4294967264  ;;  %v215_v0 = vlaneseq  ;;  %v1499_v2 = vmov 0   ;;  %v988_v4 = vld [vmem:[#allocation3] ss:$0 sm:$0xff]  ;;  %v1767_v6 = vld [vmem:[#allocation9] sm:$0xff] }
  0xec   :  { %382 = vmatprep.mubr.bf16.mxu1 %v1499_v2  ;;  %v991_v5 = vld [vmem:[#allocation6] ss:$0 sm:$0xff]  ;;  %vm343_vm0 = vcmask 1043456   ;;  %v1771_v7 = vld [vmem:[#allocation9 + $0x8] sm:$0xff]  ;;  %v330_v8 = vld [vmem:[#allocation12] sm:$0xff]  ;;  %v1500_v9 = vmov 0.0  }
  0xed   :  { %v1763_v1 = vshrl.u32 %v215_v0, 7  ;;  %v1781_v16 = vpack.c.bf16 %v1771_v7, %v1767_v6  ;;  %v997_v17 = vcombine.high %v330_v8, %v330_v8  ;;  %v318_v18 = vld [vmem:[#allocation8] sm:$0xff]  ;;  %v319_v19 = vld [vmem:[#allocation8 + $0x8] sm:$0xff]  ;;  %v996_v20 = vcombine.low %v330_v8, %v330_v8  ;;  %v1112_v21 = vld [vmem:[#allocation11 + $0x4] ss:$8 sps:$4 sm:$0xff]   ;;  %s1501_s12 = smov 96  }
  0xee   :  { %v1110_v23 = vld [vmem:[#allocation11] ss:$8 sps:$4 sm:$0xff]   ;;  %v322_v25 = vpack.c.bf16 %v319_v19, %v318_v18  ;;  %vm336_vm5 = vcmask 64512   ;;  %vm262_vm6 = vcmask 130048   ;;  %v1115_v31 = vld [vmem:[#allocation11 + $0x14] ss:$8 sps:$4 sm:$0xff]  }
  0xef   :  { %v217_v3 = vadd.s32 8, %v1763_v1  ;;  %vm223_vm1 = vcmp.eq.s32.totalorder %v1763_v1, %v988_v4  ;;  %vm235_vm3 = vcmp.eq.s32.totalorder %v1763_v1, %v991_v5  ;;  %1047 = vmatprep.subr.bf16.mxu0 %v1781_v16  ;;  %998 = vmatprep.subr.msk.bf16.mxu1 %vm343_vm0, %v997_v17  ;;  %v345_v24 = vsel %vm343_vm0, %v996_v20, 0  ;;  %v320_v26 = vld [vmem:[#allocation8 + $0x10] sm:$0xff]  ;;  %v321_v27 = vld [vmem:[#allocation8 + $0x18] sm:$0xff]  ;;  %v1113_v32 = vld [vmem:[#allocation11 + $0x10] ss:$8 sps:$4 sm:$0xff]  }
  0xf0   :  { %v989_v10 = vsel %vm223_vm1, 1.0, %v1500_v9  ;;  %v992_v12 = vsel %vm235_vm3, 1.0, %v1500_v9  ;;  %1048 = vmatpush3.bf16.msra.mxu0 %v1781_v16  ;;  %351 = vmatpush1.bf16.msra.mxu1 %v345_v24  ;;  %v323_v28 = vpack.c.bf16 %v321_v27, %v320_v26  ;;  %vm212_vm7 = vcmask 261120   ;;  %v1116_v33 = vld [vmem:[#allocation15] sm:$0xff]   ;;  %v1117_v34 = vld [vmem:[#allocation15 + $0x8] sm:$0xff]   ;;  %v1118_v35 = vld [vmem:[#allocation15 + $0x10] sm:$0xff]  }
  0xf1   :  { %vm224_vm2 = vcmp.eq.s32.totalorder %v217_v3, %v988_v4  ;;  %vm236_vm4 = vcmp.eq.s32.totalorder %v217_v3, %v991_v5  ;;  %430 = vmatprep.subr.bf16.mxu1 %v1112_v21  ;;  %608 = vmatprep.subr.bf16.mxu0 %v1499_v2  ;;  %213 = vst.msk [vmem:[#allocation2] sm:$0xff] %vm212_vm7, %v1500_v9  ;;  %214 = vst.msk [vmem:[#allocation2 + $0x8] sm:$0xff] %vm212_vm7, %v1500_v9  ;;  %v1119_v36 = vld [vmem:[#allocation15 + $0x18] sm:$0xff]   ;;  %v1120_v37 = vld [vmem:[#allocation15 + $0x20] sm:$0xff]   ;;  %v487_v49 = vsub.s32 0, %v1763_v1  ;;  %vm1502_vm8 = vmmov 0  }
  0xf2   :  { %v990_v11 = vsel %vm224_vm2, 1.0, %v1500_v9  ;;  %v993_v13 = vsel %vm236_vm4, 1.0, %v1500_v9  ;;  %v1121_v38 = vld [vmem:[#allocation15 + $0x28] sm:$0xff]   ;;  %v1122_v39 = vld [vmem:[#allocation15 + $0x30] sm:$0xff]   ;;  %v1123_v46 = vld [vmem:[#allocation15 + $0x38] sm:$0xff]   ;;  %v491_v51 = vsub.s32 1, %v1763_v1 }
  0xf3   :  { %v229_v14 = vpack.c.bf16 %v990_v11, %v989_v10  ;;  %v1777_v15 = vpack.c.bf16 %v993_v13, %v992_v12  ;;  %999 = vmatmul.mubr.msk.bf16.vlgmr.msra.gmra.mrb[0].mxu1 %vm336_vm5, %v322_v25  ;;  %v1124_v47 = vld [vmem:[#allocation15 + $0x40] sm:$0xff]   ;;  %v1125_v48 = vld [vmem:[#allocation15 + $0x48] sm:$0xff]   ;;  %v483_v50 = vld [vmem:[#allocation14] sm:$0x3]  ;;  %s1503_s28 = smov 32  }
  0xf4   :  { %431 = vmatpush1.bf16.msra.mxu1 %v1110_v23  ;;  %392 = vmatprep.mubr.bf16.mxu1 %v1499_v2  ;;  %v488_v52 = vrot.slane %v483_v50, %v487_v49  ;;  %v492_v53 = vrot.slane %v483_v50, %v491_v51  ;;  %v1007_v23 = vld [vmem:[#allocation17] ss:$0 sm:$0xff] }
  0xf5   :  { %v242_v22 = vsub.bf16 %v229_v14, %v1777_v15  ;;  %432 = vmatprep.subr.bf16.mxu1 %v1115_v31 }
  0xf7   :  { %246 = vxpose.xlu0.c.b16.start.end [1/1] (short) (narrow) %v242_v22, 32 }
  0xf8   :  { %433 = vmatpush1.bf16.msra.mxu1 %v1113_v32 }
  0xf9   :  { %1053 = vmatprep.subr.bf16.mxu1 %v1500_v9 }
  0xfb   :  { %1000 = vmatmul.mubr.msk.bf16.gmra.mrb[4].mxu1 %vm336_vm5, %v323_v28 }
  0xfc   :  { %462 = vmatprep.mubr.bf16.mxu1 %v1499_v2 }
 0x15d   :  { %v254_v29 = vpop.trf.xlu0 }
 0x15e   :  { %1049 = vmatprep.mubr.msk.bf16.mxu0 %vm262_vm6, %v254_v29 }
 0x161   :  { %v255_v30 = vpop.trf.xlu0 }
 0x162   :  { %1050 = vmatmul.mubr.msk.bf16.vlgmr.msra.gmra.mrb[0].mxu0 %vm262_vm6, %v255_v30 }
 0x163   :  { %609 = vmatpush1.bf16.msra.mxu0 %v1116_v33 }
 0x164   :  { %610 = vmatprep.subr.bf16.mxu0 %v1499_v2 }
 0x167   :  { %611 = vmatpush1.bf16.msra.mxu0 %v1117_v34 }
 0x168   :  { %612 = vmatprep.subr.bf16.mxu0 %v1499_v2 }
 0x16b   :  { %613 = vmatpush1.bf16.msra.mxu0 %v1118_v35 }
 0x16c   :  { %614 = vmatprep.subr.bf16.mxu0 %v1499_v2 }
 0x16f   :  { %615 = vmatpush1.bf16.msra.mxu0 %v1119_v36 }
 0x170   :  { %616 = vmatprep.subr.bf16.mxu0 %v1499_v2 }
 0x173   :  { %617 = vmatpush1.bf16.msra.mxu0 %v1120_v37 }
 0x174   :  { %618 = vmatprep.subr.bf16.mxu0 %v1499_v2 }
 0x177   :  { %619 = vmatpush1.bf16.msra.mxu0 %v1121_v38 }
 0x178   :  { %620 = vmatprep.subr.bf16.mxu0 %v1499_v2 }
 0x17b   :  { %621 = vmatpush1.bf16.msra.mxu0 %v1122_v39 }
 0x17c   :  { %622 = vmatprep.subr.bf16.mxu0 %v1499_v2 }
 0x17f   :  { %623 = vmatpush1.bf16.msra.mxu0 %v1123_v46 }
 0x180   :  { %624 = vmatprep.subr.bf16.mxu0 %v1499_v2 }
 0x183   :  { %625 = vmatpush1.bf16.msra.mxu0 %v1124_v47 }
 0x184   :  { %626 = vmatprep.subr.bf16.mxu0 %v1499_v2 }
 0x187   :  { %627 = vmatpush1.bf16.msra.mxu0 %v1125_v48 }
 0x235   :  { %v1051_v40 = vpop.f32.mrb[0].mxu0 }
 0x236   :  { %v303_v41 = vpop.f32.mrb[1].mxu0 }
 0x237   :  { %v1052_v42 = vpop.f32.mrb[2].mxu0 }
 0x238   :  { %v325_v43 = vpack.c.bf16 %v1052_v42, %v1051_v40  ;;  %v306_v44 = vpop.f32.mrb[3].mxu0 }
 0x239   :  { %v324_v45 = vpack.c.bf16 %v306_v44, %v303_v41 }
 0x23b   :  { %1005 = vmatmul.mubr.msk.bf16.vlgmr.msra.gmra.mrb[0].mxu1 %vm212_vm7, %v324_v45 }
 0x23c   :  { %472 = vmatprep.mubr.bf16.mxu1 %v1499_v2 }
 0x243   :  { %1006 = vmatmul.mubr.msk.bf16.gmra.mrb[4].mxu1 %vm212_vm7, %v325_v43 }
 0x244   :  { %1057 = vmatprep.mubr.msk.bf16.mxu1 %vm1502_vm8, %v1500_v9 }
 0x30e   :  { %v464_v54 = vpop.f32.mrb[0].mxu1 }
 0x30f   :  { %v495_v55 = vadd.f32 %v488_v52, %v464_v54  ;;  %v466_v56 = vpop.f32.mrb[1].mxu1 }
 0x310   :  { %v496_v57 = vadd.f32 %v492_v53, %v466_v56  ;;  %v468_v58 = vpop.f32.mrb[2].mxu1 }
 0x311   :  { %v497_v59 = vadd.f32 %v488_v52, %v468_v58  ;;  %v470_v60 = vpop.f32.mrb[3].mxu1  ;;  %v503_v62 = vmax.f32 %v495_v55, 0.0 }
 0x312   :  { %v498_v61 = vadd.f32 %v492_v53, %v470_v60  ;;  %v504_v0 = vmax.f32 %v496_v57, 0.0 }
 0x313   :  { %v505_v63 = vmax.f32 %v497_v59, 0.0 }
 0x314   :  { %v506_v2 = vmax.f32 %v498_v61, 0.0 }
 0x315   :  { %v511_v3 = vpack.c.bf16 %v505_v63, %v503_v62  ;;  %v1126_v62 = vld [vmem:[#allocation18] sm:$0xff]   ;;  %v1127_v63 = vld [vmem:[#allocation18 + $0x8] sm:$0xff]  }
 0x316   :  { %v512_v4 = vpack.c.bf16 %v506_v2, %v504_v0  ;;  %v474_v5 = vpop.f32.mrb[4].mxu1  ;;  %v701_v0 = vld [vmem:[#allocation2] sm:$0xff] }
 0x317   :  { %v499_v8 = vadd.f32 %v488_v52, %v474_v5  ;;  %v476_v10 = vpop.f32.mrb[5].mxu1 }
 0x318   :  { %v500_v1 = vadd.f32 %v492_v53, %v476_v10  ;;  %v478_v11 = vpop.f32.mrb[6].mxu1  ;;  %1018 = vmatprep.mubr.msk.bf16.mxu0 %vm212_vm7, %v512_v4 }
 0x319   :  { %v501_v12 = vadd.f32 %v488_v52, %v478_v11  ;;  %v480_v13 = vpop.f32.mrb[7].mxu1  ;;  %641 = vmatmul.mubr.bf16.vlgmr.msra.gmra.mrb[4].mxu0 %v511_v3  ;;  %v507_v17 = vmax.f32 %v499_v8, 0.0  ;;  %v702_v3 = vld [vmem:[#allocation2 + $0x8] sm:$0xff] }
 0x31a   :  { %v502_v14 = vadd.f32 %v492_v53, %v480_v13  ;;  %v508_v19 = vmax.f32 %v500_v1, 0.0 }
 0x31b   :  { %v509_v18 = vmax.f32 %v501_v12, 0.0  ;;  %v1128_v12 = vld [vmem:[#allocation20] sm:$0xff]  }
 0x31c   :  { %v510_v20 = vmax.f32 %v502_v14, 0.0  ;;  %v1129_v14 = vld [vmem:[#allocation20 + $0x8] sm:$0xff]  }
 0x31d   :  { %v513_v21 = vpack.c.bf16 %v509_v18, %v507_v17 }
 0x31e   :  { %v514_v22 = vpack.c.bf16 %v510_v20, %v508_v19 }
 0x320   :  { %1019 = vmatprep.mubr.msk.bf16.mxu0 %vm212_vm7, %v514_v22 }
 0x321   :  { %649 = vmatmul.mubr.bf16.gmra.mrb[8].mxu0 %v513_v21  ;;  %v1029_v21 = vld [vmem:[#allocation23] ss:$0 sm:$0xff] }
 0x3ec   :  { %v642_v24 = vpop.f32.mrb[4].mxu0 }
 0x3ed   :  { %v643_v25 = vadd.f32 %v1007_v23, %v642_v24  ;;  %v644_v26 = vpop.f32.mrb[5].mxu0 }
 0x3ee   :  { %v645_v27 = vpop.f32.mrb[6].mxu0 }
 0x3ef   :  { %v1020_v28 = vmul.f32 -1.442695, %v643_v25  ;;  %v646_v29 = vadd.f32 %v1007_v23, %v645_v27  ;;  %v647_v30 = vpop.f32.mrb[7].mxu0 }
 0x3f1   :  { %1130 = vpow2.f32 %v1020_v28  ;;  %v1021_v31 = vmul.f32 -1.442695, %v646_v29 }
 0x3f3   :  { %1132 = vpow2.f32 %v1021_v31 }
 0x3f4   :  { %v650_v32 = vpop.f32.mrb[8].mxu0 }
 0x3f5   :  { %v651_v33 = vadd.f32 %v1007_v23, %v650_v32  ;;  %v652_v34 = vpop.f32.mrb[9].mxu0 }
 0x3f6   :  { %v653_v35 = vpop.f32.mrb[10].mxu0 }
 0x3f7   :  { %v1022_v36 = vmul.f32 -1.442695, %v651_v33  ;;  %v654_v37 = vadd.f32 %v1007_v23, %v653_v35  ;;  %v655_v38 = vpop.f32.mrb[11].mxu0 }
 0x3f9   :  { %1134 = vpow2.f32 %v1022_v36  ;;  %v1023_v39 = vmul.f32 -1.442695, %v654_v37 }
 0x3fb   :  { %v1131_v40 = vpop.eup %1130  ;;  %1136 = vpow2.f32 %v1023_v39 }
 0x3fc   :  { %v669_v41 = vadd.f32 1.0, %v1131_v40 }
 0x3fd   :  { %v1133_v42 = vpop.eup %1132 }
 0x3fe   :  { %1138 = vrcp.f32 %v669_v41  ;;  %v670_v43 = vadd.f32 1.0, %v1133_v42 }
 0x400   :  { %1140 = vrcp.f32 %v670_v43 }
 0x403   :  { %v1135_v44 = vpop.eup %1134 }
 0x404   :  { %v671_v45 = vadd.f32 1.0, %v1135_v44 }
 0x405   :  { %v1137_v46 = vpop.eup %1136 }
 0x406   :  { %1142 = vrcp.f32 %v671_v45  ;;  %v672_v47 = vadd.f32 1.0, %v1137_v46 }
 0x408   :  { %v1139_v48 = vpop.eup %1138  ;;  %1144 = vrcp.f32 %v672_v47 }
 0x409   :  { %685 = vrot.lane.b32.xlu0 %v1139_v48, %s1501_s12 }
 0x40a   :  { %v1141_v49 = vpop.eup %1140 }
 0x40b   :  { %687 = vrot.lane.b32.xlu1 %v1141_v49, %s1501_s12 }
 0x410   :  { %v1143_v50 = vpop.eup %1142 }
 0x411   :  { %689 = vrot.lane.b32.xlu1 %v1143_v50, %s1501_s12 }
 0x412   :  { %v1145_v51 = vpop.eup %1144 }
 0x415   :  { %691 = vrot.lane.b32.xlu1 %v1145_v51, %s1501_s12 }
 0x47b   :  { %v686_v52 = vpop.permute.xlu0 %685 }
 0x47c   :  { %v697_v54 = vmul.f32 %v686_v52, %v643_v25 }
 0x47d   :  { %v688_v53 = vpop.permute.xlu1 %687 }
 0x47e   :  { %v698_v55 = vmul.f32 %v688_v53, %v646_v29 }
 0x480   :  { %v703_v56 = vpack.c.bf16 %v698_v55, %v697_v54 }
 0x482   :  { %1054 = vmatpush3.bf16.msra.mxu1 %v703_v56 }
 0x483   :  { %v690_v57 = vpop.permute.xlu1 %689  ;;  %1055 = vmatprep.subr.bf16.mxu1 %v1500_v9 }
 0x484   :  { %v699_v59 = vmul.f32 %v690_v57, %v651_v33 }
 0x487   :  { %v692_v58 = vpop.permute.xlu1 %691 }
 0x488   :  { %v700_v60 = vmul.f32 %v692_v58, %v654_v37 }
 0x48a   :  { %v704_v61 = vpack.c.bf16 %v700_v60, %v699_v59 }
 0x48c   :  { %1056 = vmatpush3.bf16.msra.mxu1 %v704_v61 }
 0x48d   :  { %1061 = vmatprep.subr.bf16.mxu1 %v1500_v9 }
 0x48f   :  { %1058 = vmatmul.mubr.msk.bf16.vlgmr.msra.gmra.mrb[8].mxu1 %vm212_vm7, %v1777_v15 }
 0x490   :  { %1065 = vmatprep.mubr.msk.bf16.mxu1 %vm1502_vm8, %v1500_v9  ;;  %1062 = vmatpush3.bf16.msra.mxu1 %v1126_v62 }
 0x491   :  { %1063 = vmatprep.subr.bf16.mxu1 %v1500_v9 }
 0x494   :  { %1064 = vmatpush3.bf16.msra.mxu1 %v1127_v63 }
 0x495   :  { %1069 = vmatprep.subr.bf16.mxu1 %v1500_v9 }
 0x562   :  { %v742_v2 = vpop.f32.mrb[8].mxu1 }
 0x563   :  { %v749_v4 = vadd.f32 %v742_v2, %v701_v0  ;;  %v1059_v5 = vpop.f32.mrb[9].mxu1 }
 0x564   :  { %v745_v8 = vpop.f32.mrb[10].mxu1 }
 0x565   :  { %751 = vst.msk [vmem:[#allocation2] sm:$0xff] %vm212_vm7, %v749_v4  ;;  %v750_v15 = vadd.f32 %v745_v8, %v702_v3  ;;  %v1060_v10 = vpop.f32.mrb[11].mxu1 }
 0x567   :  { %752 = vst.msk [vmem:[#allocation2 + $0x8] sm:$0xff] %vm212_vm7, %v750_v15 }
 0x56c   :  { %v758_v1 = vld [vmem:[#allocation2] sm:$0xff] }
 0x56e   :  { %v759_v11 = vld [vmem:[#allocation2 + $0x8] sm:$0xff] }
 0x56f   :  { %v760_v13 = vpack.c.bf16 %v759_v11, %v758_v1 }
 0x571   :  { %1066 = vmatmul.mubr.msk.bf16.vlgmr.msra.gmra.mrb[12].mxu1 %vm212_vm7, %v760_v13 }
 0x572   :  { %1070 = vmatpush3.bf16.msra.mxu1 %v1128_v12  ;;  %1073 = vmatprep.mubr.msk.bf16.mxu1 %vm1502_vm8, %v1500_v9 }
 0x573   :  { %1071 = vmatprep.subr.bf16.mxu1 %v1500_v9  ;;  %v1025_v9 = vld [vmem:[#allocation21] ss:$0 sm:$0xff] }
 0x576   :  { %1072 = vmatpush3.bf16.msra.mxu1 %v1129_v14 }
 0x579   :  { %1074 = vmatmul.mubr.msk.bf16.vlgmr.msra.gmra.mrb[16].mxu1 %vm212_vm7, %v1781_v16 }
 0x644   :  { %v821_v17 = vpop.f32.mrb[12].mxu1 }
 0x645   :  { %v1067_v18 = vpop.f32.mrb[13].mxu1  ;;  %v822_v28 = vadd.f32 %v1025_v9, %v821_v17 }
 0x646   :  { %v824_v19 = vpop.f32.mrb[14].mxu1 }
 0x647   :  { %v1068_v20 = vpop.f32.mrb[15].mxu1  ;;  %v825_v30 = vadd.f32 %v1025_v9, %v824_v19 }
 0x64c   :  { %v888_v22 = vpop.f32.mrb[16].mxu1 }
 0x64d   :  { %v889_v23 = vadd.f32 %v1029_v21, %v888_v22  ;;  %v1075_v24 = vpop.f32.mrb[17].mxu1 }
 0x64e   :  { %v891_v25 = vpop.f32.mrb[18].mxu1 }
 0x64f   :  { %911 = vrot.lane.b32.xlu1 %v889_v23, %s1488_s5  ;;  %v1076_v26 = vpop.f32.mrb[19].mxu1  ;;  %v892_v27 = vadd.f32 %v1029_v21, %v891_v25  ;;  %v895_v29 = vadd.f32 %v889_v23, %v822_v28 }
 0x651   :  { %v1033_v16 = vmul.f32 -1.442695, %v895_v29  ;;  %v896_v31 = vadd.f32 %v892_v27, %v825_v30 }
 0x653   :  { %913 = vrot.lane.b32.xlu1 %v892_v27, %s1488_s5  ;;  %1146 = vpow2.f32 %v1033_v16  ;;  %v1034_v32 = vmul.f32 -1.442695, %v896_v31 }
 0x655   :  { %1148 = vpow2.f32 %v1034_v32 }
 0x65d   :  { %v1147_v33 = vpop.eup %1146 }
 0x65e   :  { %v903_v34 = vadd.f32 1.0, %v1147_v33 }
 0x65f   :  { %v1149_v35 = vpop.eup %1148 }
 0x660   :  { %1150 = vrcp.f32 %v903_v34  ;;  %v904_v36 = vadd.f32 1.0, %v1149_v35 }
 0x662   :  { %1152 = vrcp.f32 %v904_v36 }
 0x66a   :  { %v1151_v37 = vpop.eup %1150 }
 0x66b   :  { %v931_v50 = vsub.f32 1.0, %v1151_v37 }
 0x66c   :  { %v1153_v40 = vpop.eup %1152 }
 0x66d   :  { %v932_v56 = vsub.f32 1.0, %v1153_v40 }
 0x6c1   :  { %v912_v38 = vpop.permute.xlu1 %911 }
 0x6c2   :  { %v917_v39 = vmul.f32 %v1151_v37, %v912_v38 }
 0x6c4   :  { %921 = vrot.lane.b32.xlu0 %v917_v39, %s1488_s5 }
 0x6c5   :  { %v914_v41 = vpop.permute.xlu1 %913 }
 0x6c6   :  { %v918_v42 = vmul.f32 %v1153_v40, %v914_v41 }
 0x6c8   :  { %923 = vrot.lane.b32.xlu1 %v918_v42, %s1488_s5  ;;  %s1504_s5 = smov [#allocation24]  }
 0x6c9   :  { %s970_s29 = sshll.u32 %s1504_s5, 4  ;;  %s971_s29 = int_to_ptr.vmem [resolvable:$true] %s970_s29 }
 0x6ca   :  { %s1444_s18 = scalar_lea.vmem %s971_s29, 256  ;;  %p1449_p7 = scmp.lt.s32.totalorder %s971_s29, %s971_s29 }
 0x6cb   :  { %p1445_p6 = scmp.ne.s32.totalorder %s971_s29, %s1444_s18  ;;  %p1450_p8 = scmp.lt.s32.totalorder %s1444_s18, %s1444_s18 }
 0x6cd   :  { %p1451_p9 = por %p1450_p8, %p1449_p7 }
 0x6cf   :  { %p1452_p10 = pnand %p1451_p9, %p1445_p6 }
 0x736   :  { %v922_v43 = vpop.permute.xlu0 %921 }
 0x737   :  { %v927_v44 = vadd.f32 %v922_v43, %v822_v28 }
 0x739   :  { %1154 = vtanh.f32 %v927_v44 }
 0x73a   :  { %v924_v45 = vpop.permute.xlu1 %923 }
 0x73b   :  { %v928_v46 = vadd.f32 %v924_v45, %v825_v30 }
 0x73d   :  { %1156 = vtanh.f32 %v928_v46 }
 0x743   :  { %v1155_v47 = vpop.eup %1154 }
 0x744   :  { %935 = vrot.lane.b32.xlu0 %v1155_v47, %s1501_s12 }
 0x747   :  { %v1157_v48 = vpop.eup %1156 }
 0x748   :  { %945 = vrot.lane.b32.xlu0 %v1767_v6, %s1503_s28  ;;  %937 = vrot.lane.b32.xlu1 %v1157_v48, %s1501_s12 }
 0x74c   :  { %947 = vrot.lane.b32.xlu1 %v1771_v7, %s1503_s28 }
 0x7b6   :  { %v936_v49 = vpop.permute.xlu0 %935 }
 0x7b7   :  { %v941_v53 = vmul.f32 %v936_v49, %v931_v50 }
 0x7ba   :  { %v946_v51 = vpop.permute.xlu0 %945  ;;  %v938_v52 = vpop.permute.xlu1 %937 }
 0x7bb   :  { %v951_v54 = vmul.f32 %v1151_v37, %v946_v51  ;;  %v942_v58 = vmul.f32 %v938_v52, %v932_v56 }
 0x7bd   :  { %v953_v55 = vadd.f32 %v951_v54, %v941_v53 }
 0x7be   :  { %v948_v57 = vpop.permute.xlu1 %947 }
 0x7bf   :  { %v952_v59 = vmul.f32 %v1153_v40, %v948_v57  ;;  %957 = vrot.lane.b32.xlu0 %v953_v55, %s1501_s12 }
 0x7c1   :  { %v954_v60 = vadd.f32 %v952_v59, %v942_v58 }
 0x7c3   :  { %959 = vrot.lane.b32.xlu1 %v954_v60, %s1501_s12 }
 0x831   :  { %v958_v6 = vpop.permute.xlu0 %957 }
 0x832   :  { %963 = vst.msk [vmem:[#allocation24] sm:$0xff] %vm212_vm7, %v958_v6 }
 0x835   :  { %v960_v7 = vpop.permute.xlu1 %959 }
 0x836   :  { %964 = vst.msk [vmem:[#allocation24 + $0x8] sm:$0xff] %vm212_vm7, %v960_v7 }
 0x837   :  { %1455 = shalt.err (!%p1452_p10)
}
 0x838   :  { %s1456_s21 = scalar_lea.hbm %s1874_s13, 256 }
 0x839   :  { %p1457_p11 = scmp.ne.s32.totalorder %s1874_s13, %s1456_s21  ;;  %p1460_p12 = scmp.lt.u32.totalorder %s1456_s21, %s1874_s13 }
 0x83b   :  { %p1462_p13 = pnand %p1460_p12, %p1457_p11 }
 0x83d   :  { %1465 = shalt.err (!%p1462_p13)
}
 0x83e   :  { %976 = dma.vmem_to_hbm [thread:$0]  %s971_s29, 256, %s1874_s13, [#allocation5], %s1485_s26, %s1485_s26, %s1486_s16  }
 0x83f   :  { %1480 = dma.done.wait [#allocation5], 256  }
 0x840   :  { %1481 = vsyncadd [#allocation5], 4294967040 }
 0x841   :  { %980 = vsyncpa [#allocation4], 1 }
 0x842   :  { %981 = vsyncpa [#allocation7], 1 }
 0x843   :  { %982 = vsyncpa [#allocation10], 1 }
 0x844   :  { %983 = vsyncpa [#allocation13], 1 }
 0x845   :  { %984 = vsyncpa [#allocation16], 1 }
 0x846   :  { %985 = vsyncpa [#allocation19], 1 }
 0x847   :  { %986 = vsyncpa [#allocation22], 1 }
 0x848   :  { %987 = vsyncpa [#allocation5], 1 }

</bundles_post_ra>
